<compile_context>
chip_gen: v5e
topology: v5e:2x2
jax: 0.10.0
libtpu: 0.0.40
codegen_flags: <defaults>
</compile_context>

<pallas_src>
import jax
import jax.numpy as jnp
from jax import lax
from jax.experimental import pallas as pl
from jax.experimental.pallas import tpu as pltpu

EPS = 1e-12  # F.normalize default eps


def _memory_update_kernel(k_ref, q_ref, v_ref, out_ref, acc_ref, rmax_ref):
    """One (batch, N-tile) grid step.

    k_ref   : (m, d)   memory keys (resident)
    q_ref   : (d, Nt)  query tile   (feature dim on sublanes, queries on lanes)
    v_ref   : (d, Nt)  value tile
    out_ref : (m, d)   updated memory (written on the last grid step)
    acc_ref : (m, d)   VMEM scratch — running scatter-sum accumulator
    rmax_ref: (m, 1)   VMEM scratch — running per-slot column max of S
    """
    is_first = (pl.program_id(0) == 0) & (pl.program_id(1) == 0)
    is_last = (pl.program_id(0) == pl.num_programs(0) - 1) & (
        pl.program_id(1) == pl.num_programs(1) - 1)

    @pl.when(is_first)
    def _():
        acc_ref[...] = jnp.zeros_like(acc_ref)
        rmax_ref[...] = jnp.full_like(rmax_ref, -jnp.inf)

    k = k_ref[...].astype(jnp.float32)          # (m, d)
    q = q_ref[...].astype(jnp.float32)          # (d, Nt)
    v = v_ref[...].astype(jnp.float32)          # (d, Nt)
    m = k.shape[0]

    # F.normalize(query, dim=1): per-query L2 normalize over the feature axis
    # (axis 0 in this layout).  rsqrt(max(sumsq, eps^2)) == 1 / max(||x||, eps).
    inv_qn = lax.rsqrt(jnp.maximum(jnp.sum(q * q, axis=0, keepdims=True), EPS * EPS))
    q_n = q * inv_qn                            # (d, Nt)

    # S^T tile: (m, Nt) — lane-dense MXU output.
    s = jnp.dot(k, q_n, preferred_element_type=jnp.float32)

    # argmax over the memory axis (axis 0, m slots) per query; first-occurrence
    # tie-break matches torch.argmax / torch.topk(k=1).
    row_ids = lax.broadcasted_iota(jnp.int32, s.shape, 0)          # (m, Nt)
    per_q_max = jnp.max(s, axis=0, keepdims=True)                  # (1, Nt)
    first_arg = jnp.min(jnp.where(s == per_q_max, row_ids, m),
                        axis=0, keepdims=True)                     # (1, Nt)
    sel = row_ids == first_arg                                     # (m, Nt) bool

    # Online column max (over all N queries) per memory slot, with accumulator
    # rescaling — flash-attention style.
    tile_max = jnp.max(s, axis=1, keepdims=True)                   # (m, 1)
    new_max = jnp.maximum(rmax_ref[...], tile_max)                 # (m, 1)
    acc_ref[...] = acc_ref[...] * jnp.exp(rmax_ref[...] - new_max)
    rmax_ref[...] = new_max

    # Weighted one-hot scatter-sum:
    #   acc[i, :] += sum_n [argmax(n) == i] * exp(S[n,i] - colmax_i) * V[:, n]
    # (softmax denominator / colmax division cancel exactly — see header).
    w = jnp.where(sel, jnp.exp(s - new_max), 0.0)                  # (m, Nt)
    acc_ref[...] += lax.dot_general(
        w, v, (((1,), (1,)), ((), ())), preferred_element_type=jnp.float32)  # (m, d)

    @pl.when(is_last)
    def _():
        new_mem = acc_ref[...] + k
        inv_norm = lax.rsqrt(
            jnp.maximum(jnp.sum(new_mem * new_mem, axis=1, keepdims=True), EPS * EPS))
        out_ref[...] = (new_mem * inv_norm).astype(out_ref.dtype)


def _pick_n_tile(hw, target=2048):
    """Largest multiple of 128 that divides hw and is <= target; else full hw."""
    if hw <= target:
        return hw
    best = hw
    t = 128
    while t <= target:
        if hw % t == 0:
            best = t
        t += 128
    return best


def memory_trans_update(keys, query, value, *, n_tile_target=2048):
    """keys: (m, d) f32; query/value: (B, C, H, W) with C == d."""
    b, c, h, w = query.shape
    m, d = keys.shape
    assert c == d
    hw = h * w

    # NCHW already provides the (d, N) layout the kernel wants: just merge H,W.
    q3 = query.reshape(b, c, hw)
    v3 = value.reshape(b, c, hw)

    n_tile = _pick_n_tile(hw, n_tile_target)
    n_tiles = hw // n_tile
    grid = (b, n_tiles)

    # TODO(synk): a v7x 2-TensorCore split of the N reduction (per-core partial
    # accumulators + tiny (m,d) merge) is not implemented; both grid axes carry
    # the reduction so they are marked "arbitrary".
    return pl.pallas_call(
        _memory_update_kernel,
        out_shape=jax.ShapeDtypeStruct((m, d), jnp.float32),
        grid_spec=pltpu.PrefetchScalarGridSpec(
            num_scalar_prefetch=0,
            grid=grid,
            in_specs=[
                pl.BlockSpec((m, d), lambda bi, ti: (0, 0)),            # keys (resident)
                pl.BlockSpec((None, c, n_tile), lambda bi, ti: (bi, 0, ti)),  # q tile (d, Nt)
                pl.BlockSpec((None, c, n_tile), lambda bi, ti: (bi, 0, ti)),  # v tile (d, Nt)
            ],
            out_specs=pl.BlockSpec((m, d), lambda bi, ti: (0, 0)),
            scratch_shapes=[
                pltpu.VMEM((m, d), jnp.float32),   # accumulator
                pltpu.VMEM((m, 1), jnp.float32),   # running column max
            ],
        ),
        compiler_params=pltpu.CompilerParams(
            dimension_semantics=("arbitrary", "arbitrary")),
    )(keys, q3, v3)


def _reference(keys, query, value):
    """Pure-JAX re-implementation of the PyTorch module (for validation)."""
    b, c, h, w = query.shape
    m, d = keys.shape
    qn = query / jnp.maximum(
        jnp.sqrt(jnp.sum(query * query, axis=1, keepdims=True)), EPS)
    q2 = jnp.transpose(qn, (0, 2, 3, 1)).reshape(-1, d)
    v2 = jnp.transpose(value, (0, 2, 3, 1)).reshape(-1, d)
    s = q2 @ keys.T                                         # (N, m)
    score_query = jax.nn.softmax(s, axis=0)
    gathering = jnp.argmax(s, axis=1)                       # == argmax softmax(s, axis=1)
    onehot = jax.nn.one_hot(gathering, m, dtype=jnp.float32)
    w_ = onehot * score_query / jnp.max(score_query, axis=0, keepdims=True)
    acc = w_.T @ v2                                         # (m, d)
    new = acc + keys
    return new / jnp.maximum(
        jnp.sqrt(jnp.sum(new * new, axis=1, keepdims=True)), EPS)


if __name__ == "__main__":
    # Module hyper-params (deterministic, synthetic): memory_size=8, feature_dim=key_dim=32
    memory_size = 8
    feature_dim = 32
    B, H, W = 2, 8, 8

    k0, k1, k2 = jax.random.split(jax.random.PRNGKey(0), 3)
    keys = jax.random.normal(k0, (memory_size, feature_dim), dtype=jnp.float32)
    query = jax.random.normal(k1, (B, feature_dim, H, W), dtype=jnp.float32)
    value = jax.random.normal(k2, (B, feature_dim, H, W), dtype=jnp.float32)

    out = memory_trans_update(keys, query, value)
    out = jax.block_until_ready(out)

    assert out.shape == (memory_size, feature_dim)
    assert bool(jnp.all(jnp.isfinite(out)))
    ref = _reference(keys, query, value)
    assert bool(jnp.allclose(out, ref, rtol=2e-5, atol=2e-5))
    print("KERNEL_OK")
</pallas_src>

<mosaic_0001>
module attributes {stable_mosaic.version = 11 : i64} {
  func.func @_memory_update_kernel(%arg0: i32, %arg1: i32, %arg2: memref<8x32xf32, #tpu.memory_space<vmem>>, %arg3: memref<1x32x64xf32, #tpu.memory_space<vmem>>, %arg4: memref<1x32x64xf32, #tpu.memory_space<vmem>>, %arg5: memref<8x32xf32, #tpu.memory_space<vmem>>, %arg6: memref<8x32xf32, #tpu.memory_space<vmem>>, %arg7: memref<8x1xf32, #tpu.memory_space<vmem>>) attributes {dimension_semantics = [#tpu.dimension_semantics<arbitrary>, #tpu.dimension_semantics<arbitrary>], iteration_bounds = array<i64: 2, 1>, scalar_prefetch = 0 : i64, scratch_operands = 2 : i64, tpu.core_type = #tpu.core_type<tc>, window_params = [{pipeline_mode = #tpu.pipeline_mode<synchronous>, transform_indices = @transform_0, window_bounds = array<i64: 8, 32>}, {transform_indices = @transform_1, window_bounds = array<i64: 1, 32, 64>}, {transform_indices = @transform_2, window_bounds = array<i64: 1, 32, 64>}, {pipeline_mode = #tpu.pipeline_mode<synchronous>, transform_indices = @transform_3, window_bounds = array<i64: 8, 32>}]} {
    %c0_i32 = arith.constant 0 : i32
    %0 = arith.cmpi eq, %arg0, %c0_i32 : i32
    %c0_i32_0 = arith.constant 0 : i32
    %1 = arith.cmpi eq, %arg1, %c0_i32_0 : i32
    %2 = arith.andi %0, %1 : i1
    %c1_i32 = arith.constant 1 : i32
    %3 = arith.cmpi eq, %arg0, %c1_i32 : i32
    %c0_i32_1 = arith.constant 0 : i32
    %4 = arith.cmpi eq, %arg1, %c0_i32_1 : i32
    %5 = arith.andi %3, %4 : i1
    %6 = arith.extui %2 : i1 to i32
    %c0_i32_2 = arith.constant 0 : i32
    %7 = arith.cmpi ne, %6, %c0_i32_2 : i32
    scf.if %7 {
      %cst_32 = arith.constant 0.000000e+00 : f32
      %56 = vector.broadcast %cst_32 : f32 to vector<8x32xf32>
      %c0_33 = arith.constant 0 : index
      %c0_34 = arith.constant 0 : index
      %57 = vector.load %arg6[%c0_33, %c0_34] : memref<8x32xf32, #tpu.memory_space<vmem>>, vector<8x32xf32>
      tpu.vector_store %arg6[%c0_33, %c0_34], %56 {strides = array<i32>} : memref<8x32xf32, #tpu.memory_space<vmem>>, vector<8x32xf32>,
      %cst_35 = arith.constant 0xFF800000 : f32
      %58 = vector.broadcast %cst_35 : f32 to vector<8x1xf32>
      %c0_36 = arith.constant 0 : index
      %c0_37 = arith.constant 0 : index
      %59 = vector.load %arg7[%c0_36, %c0_37] : memref<8x1xf32, #tpu.memory_space<vmem>>, vector<8x1xf32>
      tpu.vector_store %arg7[%c0_36, %c0_37], %58 {strides = array<i32>} : memref<8x1xf32, #tpu.memory_space<vmem>>, vector<8x1xf32>,
    } else {
    }
    %c0 = arith.constant 0 : index
    %c0_3 = arith.constant 0 : index
    %8 = vector.load %arg2[%c0, %c0_3] : memref<8x32xf32, #tpu.memory_space<vmem>>, vector<8x32xf32>
    %c0_4 = arith.constant 0 : index
    %c0_5 = arith.constant 0 : index
    %c0_6 = arith.constant 0 : index
    %9 = vector.load %arg3[%c0_4, %c0_5, %c0_6] : memref<1x32x64xf32, #tpu.memory_space<vmem>>, vector<1x32x64xf32>
    %10 = vector.shape_cast %9 : vector<1x32x64xf32> to vector<32x64xf32>
    %c0_7 = arith.constant 0 : index
    %c0_8 = arith.constant 0 : index
    %c0_9 = arith.constant 0 : index
    %11 = vector.load %arg4[%c0_7, %c0_8, %c0_9] : memref<1x32x64xf32, #tpu.memory_space<vmem>>, vector<1x32x64xf32>
    %12 = vector.shape_cast %11 : vector<1x32x64xf32> to vector<32x64xf32>
    %13 = arith.mulf %10, %10 : vector<32x64xf32>
    %cst = arith.constant dense<0.000000e+00> : vector<64xf32>
    %14 = vector.multi_reduction <add>, %13, %cst [0] : vector<32x64xf32> to vector<64xf32>
    %15 = vector.shape_cast %14 : vector<64xf32> to vector<1x64xf32>
    %cst_10 = arith.constant 1.000000e-24 : f32
    %16 = vector.broadcast %cst_10 : f32 to vector<1x64xf32>
    %17 = arith.maximumf %15, %16 : vector<1x64xf32>
    %18 = math.rsqrt %17 : vector<1x64xf32>
    %19 = vector.broadcast %18 : vector<1x64xf32> to vector<32x64xf32>
    %20 = arith.mulf %10, %19 : vector<32x64xf32>
    %cst_11 = arith.constant dense<0.000000e+00> : vector<8x64xf32>
    %21 = tpu.matmul %8, %20, %cst_11 {dimension_numbers = #tpu.dot_dimension_numbers<[1], [0], [0], [1], [0, 0, 1, 1], [], []>} : vector<8x32xf32>, vector<32x64xf32>, vector<8x64xf32> -> vector<8x64xf32>
    %22 = tpu.iota {dimensions = array<i32: 0>} : vector<8x64xi32>
    %cst_12 = arith.constant dense<0xFF800000> : vector<64xf32>
    %23 = vector.multi_reduction <maximumf>, %21, %cst_12 [0] : vector<8x64xf32> to vector<64xf32>
    %24 = vector.shape_cast %23 : vector<64xf32> to vector<1x64xf32>
    %25 = vector.broadcast %24 : vector<1x64xf32> to vector<8x64xf32>
    %26 = arith.cmpf oeq, %21, %25 : vector<8x64xf32>
    %c8_i32 = arith.constant 8 : i32
    %27 = vector.broadcast %c8_i32 : i32 to vector<8x64xi32>
    %28 = arith.select %26, %22, %27 : vector<8x64xi1>, vector<8x64xi32>
    %cst_13 = arith.constant dense<2147483647> : vector<64xi32>
    %29 = vector.multi_reduction <minsi>, %28, %cst_13 [0] : vector<8x64xi32> to vector<64xi32>
    %30 = vector.shape_cast %29 : vector<64xi32> to vector<1x64xi32>
    %31 = vector.broadcast %30 : vector<1x64xi32> to vector<8x64xi32>
    %32 = arith.cmpi eq, %22, %31 : vector<8x64xi32>
    %cst_14 = arith.constant dense<0xFF800000> : vector<8xf32>
    %33 = vector.multi_reduction <maximumf>, %21, %cst_14 [1] : vector<8x64xf32> to vector<8xf32>
    %34 = vector.shape_cast %33 : vector<8xf32> to vector<8x1xf32>
    %c0_15 = arith.constant 0 : index
    %c0_16 = arith.constant 0 : index
    %35 = vector.load %arg7[%c0_15, %c0_16] : memref<8x1xf32, #tpu.memory_space<vmem>>, vector<8x1xf32>
    %36 = arith.maximumf %35, %34 : vector<8x1xf32>
    %c0_17 = arith.constant 0 : index
    %c0_18 = arith.constant 0 : index
    %37 = vector.load %arg6[%c0_17, %c0_18] : memref<8x32xf32, #tpu.memory_space<vmem>>, vector<8x32xf32>
    %c0_19 = arith.constant 0 : index
    %c0_20 = arith.constant 0 : index
    %38 = vector.load %arg7[%c0_19, %c0_20] : memref<8x1xf32, #tpu.memory_space<vmem>>, vector<8x1xf32>
    %39 = arith.subf %38, %36 : vector<8x1xf32>
    %40 = math.exp %39 : vector<8x1xf32>
    %41 = vector.broadcast %40 : vector<8x1xf32> to vector<8x32xf32>
    %42 = arith.mulf %37, %41 : vector<8x32xf32>
    %c0_21 = arith.constant 0 : index
    %c0_22 = arith.constant 0 : index
    %43 = vector.load %arg6[%c0_21, %c0_22] : memref<8x32xf32, #tpu.memory_space<vmem>>, vector<8x32xf32>
    tpu.vector_store %arg6[%c0_21, %c0_22], %42 {strides = array<i32>} : memref<8x32xf32, #tpu.memory_space<vmem>>, vector<8x32xf32>,
    %c0_23 = arith.constant 0 : index
    %c0_24 = arith.constant 0 : index
    %44 = vector.load %arg7[%c0_23, %c0_24] : memref<8x1xf32, #tpu.memory_space<vmem>>, vector<8x1xf32>
    tpu.vector_store %arg7[%c0_23, %c0_24], %36 {strides = array<i32>} : memref<8x1xf32, #tpu.memory_space<vmem>>, vector<8x1xf32>,
    %45 = vector.broadcast %36 : vector<8x1xf32> to vector<8x64xf32>
    %46 = arith.subf %21, %45 : vector<8x64xf32>
    %47 = math.exp %46 : vector<8x64xf32>
    %cst_25 = arith.constant 0.000000e+00 : f32
    %48 = vector.broadcast %cst_25 : f32 to vector<8x64xf32>
    %49 = arith.select %32, %47, %48 : vector<8x64xi1>, vector<8x64xf32>
    %c0_26 = arith.constant 0 : index
    %c0_27 = arith.constant 0 : index
    %50 = vector.load %arg6[%c0_26, %c0_27] : memref<8x32xf32, #tpu.memory_space<vmem>>, vector<8x32xf32>
    %cst_28 = arith.constant dense<0.000000e+00> : vector<8x32xf32>
    %51 = tpu.matmul %49, %12, %cst_28 {dimension_numbers = #tpu.dot_dimension_numbers<[1], [1], [0], [0], [0, 0, 1, 0], [], []>} : vector<8x64xf32>, vector<32x64xf32>, vector<8x32xf32> -> vector<8x32xf32>
    %52 = arith.addf %50, %51 : vector<8x32xf32>
    %c0_29 = arith.constant 0 : index
    %c0_30 = arith.constant 0 : index
    %53 = vector.load %arg6[%c0_29, %c0_30] : memref<8x32xf32, #tpu.memory_space<vmem>>, vector<8x32xf32>
    tpu.vector_store %arg6[%c0_29, %c0_30], %52 {strides = array<i32>} : memref<8x32xf32, #tpu.memory_space<vmem>>, vector<8x32xf32>,
    %54 = arith.extui %5 : i1 to i32
    %c0_i32_31 = arith.constant 0 : i32
    %55 = arith.cmpi ne, %54, %c0_i32_31 : i32
    scf.if %55 {
      %c0_32 = arith.constant 0 : index
      %c0_33 = arith.constant 0 : index
      %56 = vector.load %arg6[%c0_32, %c0_33] : memref<8x32xf32, #tpu.memory_space<vmem>>, vector<8x32xf32>
      %57 = arith.addf %56, %8 : vector<8x32xf32>
      %58 = arith.mulf %57, %57 : vector<8x32xf32>
      %cst_34 = arith.constant dense<0.000000e+00> : vector<8xf32>
      %59 = vector.multi_reduction <add>, %58, %cst_34 [1] : vector<8x32xf32> to vector<8xf32>
      %60 = vector.shape_cast %59 : vector<8xf32> to vector<8x1xf32>
      %cst_35 = arith.constant 1.000000e-24 : f32
      %61 = vector.broadcast %cst_35 : f32 to vector<8x1xf32>
      %62 = arith.maximumf %60, %61 : vector<8x1xf32>
      %63 = math.rsqrt %62 : vector<8x1xf32>
      %64 = vector.broadcast %63 : vector<8x1xf32> to vector<8x32xf32>
      %65 = arith.mulf %57, %64 : vector<8x32xf32>
      %c0_36 = arith.constant 0 : index
      %c0_37 = arith.constant 0 : index
      %66 = vector.load %arg5[%c0_36, %c0_37] : memref<8x32xf32, #tpu.memory_space<vmem>>, vector<8x32xf32>
      tpu.vector_store %arg5[%c0_36, %c0_37], %65 {strides = array<i32>} : memref<8x32xf32, #tpu.memory_space<vmem>>, vector<8x32xf32>,
    } else {
    }
    return
  }
  func.func @transform_0(%arg0: i32, %arg1: i32) -> (i32, i32) {
    %c0_i32 = arith.constant 0 : i32
    %c0_i32_0 = arith.constant 0 : i32
    %c0_i32_1 = arith.constant 0 : i32
    return %c0_i32, %c0_i32_0 : i32, i32
  }
  func.func @transform_1(%arg0: i32, %arg1: i32) -> (i32, i32, i32) {
    %c0_i32 = arith.constant 0 : i32
    %c0_i32_0 = arith.constant 0 : i32
    return %arg0, %c0_i32, %arg1 : i32, i32, i32
  }
  func.func @transform_2(%arg0: i32, %arg1: i32) -> (i32, i32, i32) {
    %c0_i32 = arith.constant 0 : i32
    %c0_i32_0 = arith.constant 0 : i32
    return %arg0, %c0_i32, %arg1 : i32, i32, i32
  }
  func.func @transform_3(%arg0: i32, %arg1: i32) -> (i32, i32) {
    %c0_i32 = arith.constant 0 : i32
    %c0_i32_0 = arith.constant 0 : i32
    %c0_i32_1 = arith.constant 0 : i32
    return %c0_i32, %c0_i32_0 : i32, i32
  }
}

</mosaic_0001>

<bundles_post_ra>
// kernel: tpu_custom_call.1
= control target key start
LH: loop header
LB: loop body
LE: loop exit
PB: predicated region body
PF: predicated region fallthrough
CT: control target
= control target key end

     0   :  { %8 = vsyncpa [#allocation5], 0  ;;  %s1018_s0 = inlined_call_operand.hbm [shape: f32[8,32], index: 0, kind: input, shape index: {}]   ;;  %s1019_s1 = inlined_call_operand.hbm [shape: f32[2,32,64], index: 1, kind: input, shape index: {}]   ;;  %s1020_s2 = inlined_call_operand.hbm [shape: f32[2,32,64], index: 2, kind: input, shape index: {}]   ;;  %s1021_s3 = inlined_call_operand.hbm [shape: f32[8,32], index: 3, kind: output, shape index: {}]  }
   0x1   :  { %9 = vsyncpa [#allocation8], 0 }
   0x2   :  { %11 = vsyncpa [#allocation8 + $0x1], 0 }
   0x3   :  { %12 = vsyncpa [#allocation6], 0  ;;  %s869_s12 = smov 0   ;;  %s871_s13 = smov 0  }
   0x4   :  { %s873_s14 = smov 0   ;;  %s875_s15 = smov 0  }
   0x5   :  { %s877_s16 = smov 0   ;;  %s879_s17 = smov 0  }
   0x6 LB: > { %s30_s18 = sadd.s32 1, %s836_s16  ;;  %s60_s19 = sadd.s32 1, %s828_s14  ;;  %s840_s17 = sphi %s879_s17, %s18_s17   ;;  %s836_s16 = sphi %s877_s16, %s1029_s16   ;;  %s832_s15 = sphi %s875_s15, %s1028_s15   ;;  %s828_s14 = sphi %s873_s14, %s1027_s14   ;;  %s824_s13 = sphi %s871_s13, %s1026_s13   ;;  %s820_s12 = sphi %s869_s12, %s1025_s12  }
   0x7   : > { %p32_p0 = scmp.ge.s32.totalorder %s30_s18, 2  ;;  %p67_p1 = scmp.ne.s32.totalorder %s828_s14, %s824_s13 }
   0x8   : > { %p68_p2 = scmp.eq.s32.totalorder %s840_s17, 0  ;;  %p595_p4 = scmp.lt.s32.totalorder %s840_s17, 2 }
   0x9   : > { %s1031_s18 = smov (%p32_p0, %s30_s18), 0  ;;  %s158_s22 = sand.u32 1, %s840_s17  }
   0xa   : > { %p906_p3 = por %p68_p2, %p67_p1  ;;  %s55_s21 = ssub.s32 %s836_s16, %s1031_s18 }
   0xb   : > { %p58_p5 = scmp.eq.s32.totalorder %s55_s21, 0  ;;  %s160_s23 = sand.u32 1, %s828_s14  }
   0xc   : > { %s567_s24 = sshll.u32 %s836_s16, 5  ;;  %s545_s26 = sshll.u32 %s160_s23, 5 }
   0xd   : > { %s917_s25 = scalar_select %p58_p5, %s828_s14, %s60_s19  }
   0xe   : > { %s168_s29 = scalar_lea.hbm %s1019_s1, %s567_s24  ;;  %s162_s4 = scalar_lea.vmem [#allocation7], %s545_s26 }
   0xf   : > { %s169_s30 = sshll.u32 %s168_s29, 4  ;;  %s171_s5 = sshll.u32 %s162_s4, 4  ;;  %s170_s30 = int_to_ptr.hbm [resolvable:$true] %s169_s30  ;;  %s172_s5 = int_to_ptr.vmem [resolvable:$true] %s171_s5 }
  0x10   : > { %p926_p6 = pnand %p595_p4, %p906_p3  ;;  %s159_s7 = scalar_lea.sflag [#allocation8], %s158_s22 }
  0x11   : > { %s842_s8 = smov 128   ;;  %s843_s9 = smov 8  }
  0x12   : > { %590 = dma.hbm_to_vmem [thread:$0]  (!%p926_p6), %s170_s30, 512, %s172_s5, %s159_s7, %s842_s8, %s842_s8, %s843_s9  }
  0x13   : > { %s191_s19 = scalar_lea.hbm %s1020_s2, %s567_s24  ;;  %s185_s21 = scalar_lea.vmem [#allocation9], %s545_s26 }
  0x14   : > { %s194_s23 = sshll.u32 %s185_s21, 4  ;;  %s192_s27 = sshll.u32 %s191_s19, 4  ;;  %s195_s23 = int_to_ptr.vmem [resolvable:$true] %s194_s23  ;;  %s193_s27 = int_to_ptr.hbm [resolvable:$true] %s192_s27 }
  0x15   : > { %s936_s20 = sadd.s32 4294967295, %s840_s17   ;;  %p73_p7 = scmp.ne.s32.totalorder %s824_s13, %s820_s12 }
  0x16   : > { %p74_p8 = scmp.eq.s32.totalorder %s936_s20, 0  ;;  %p542_p9 = scmp.ge.s32.totalorder %s840_s17, 1 }
  0x17   : > { %p133_p10 = scmp.lt.s32.totalorder %s840_s17, 3  ;;  %s145_s28 = sshll.u32 %s1018_s0, 4  ;;  %s146_s28 = int_to_ptr.hbm [resolvable:$true] %s145_s28 }
  0x18   : > { %p945_p11 = por %p74_p8, %p73_p7  ;;  %s844_s29 = smov [#allocation4]  }
  0x19   : > { %p134_p12 = pnand %p542_p9, %p133_p10  ;;  %s147_s30 = sshll.u32 %s844_s29, 4  ;;  %s148_s30 = int_to_ptr.vmem [resolvable:$true] %s147_s30 }
  0x1a   : > { %593 = dma.hbm_to_vmem [thread:$0]  (!%p926_p6), %s193_s27, 512, %s195_s23, %s159_s7, %s842_s8, %s842_s8, %s843_s9  }
  0x1b   : > { %p583_p13 = pneg %p134_p12  ;;  %206 = sbr.rel (%p134_p12) target bundleno = 753 (0x2f1), region = 32 }
  0x1d   : > { %p584_p0 = pnand %p583_p13, %p74_p8 }
  0x1f   : > { %586 = dma.hbm_to_vmem [thread:$0]  (!%p584_p0), %s146_s28, 128, %s148_s30, [#allocation5]  }
  0x20   : > { %807 = dma.done.wait (%p74_p8), [#allocation5], 128  }
  0x21   : > { %809 = vsyncadd (%p74_p8), [#allocation5], 4294967168  ;;  %s213_s12 = sand.u32 1, %s936_s20   ;;  %s215_s4 = sand.u32 1, %s824_s13  }
  0x22   : > { %s553_s5 = sshll.u32 %s215_s4, 5  ;;  %s214_s10 = scalar_lea.sflag [#allocation8], %s213_s12 }
  0x23   : > { %s217_s11 = scalar_lea.vmem [#allocation7], %s553_s5 }
  0x24   : > { %811 = dma.done.wait (%p945_p11), %s214_s10, 1024  }
  0x25   : > { %813 = vsyncadd (%p945_p11), %s214_s10, 4294966272  ;;  %p251_p1 = scmp.eq.s32.totalorder %s832_s15, 0  ;;  %p255_p2 = scmp.eq.s32.totalorder %s832_s15, 1 }
  0x26   : > { %s968_s6 = scalar_lea.vmem [#allocation9], %s553_s5  ;;  %vm260_vm0 = vcmask (%p251_p1), 261120   ;;  %vm262_vm1 = vcmask (%p251_p1), 7168   ;;  %v845_v0 = vmov (%p251_p1), 0.0   ;;  %v846_v1 = vmov (%p251_p1), -inf  }
  0x27   : > { %259 = sbr.rel (!%p251_p1) target bundleno = 44 (0x2c), region = 48  ;;  %261 = vst.msk [vmem:[#allocation2] sm:$0xff] (%p251_p1), %vm260_vm0, %v845_v0 }
  0x28   : > { %263 = vst.msk [vmem:[#allocation3] sm:$0xff] (%p251_p1), %vm262_vm1, %v846_v1 }
  0x2c PF: > { %v265_v2 = vld [vmem:[%s217_s11] sm:$0xff]  ;;  %v266_v3 = vld [vmem:[%s217_s11 + $0x8] sm:$0xff]  ;;  %v267_v4 = vld [vmem:[%s217_s11 + $0x10] sm:$0xff]  ;;  %vm277_vm2 = vcmask 523264   ;;  %vm306_vm6 = vcmask 261120   ;;  %v847_v38 = vmov 0   ;;  %v330_v51 = vlaneseq }
  0x2d   : > { %v268_v5 = vld [vmem:[%s217_s11 + $0x18] sm:$0xff]  ;;  %v273_v6 = vmul.f32 %v265_v2, %v265_v2  ;;  %v274_v7 = vmul.f32 %v266_v3, %v266_v3  ;;  %v275_v8 = vmul.f32 %v267_v4, %v267_v4  ;;  %654 = vset.pattern.permute.xlu0 %v847_v38  ;;  %655 = vset.pattern.permute.xlu1 %v847_v38  ;;  %vm367_vm7 = vcmask 7168   ;;  %v271_v53 = vld [vmem:[%s968_s6 + $0x10] sm:$0xff]  ;;  %v270_v55 = vld [vmem:[%s968_s6 + $0x8] sm:$0xff] }
  0x2e   : > { %v276_v9 = vmul.f32 %v268_v5, %v268_v5  ;;  %v974_v35 = vld [vmem:[#allocation4] sm:$0xff]  ;;  %v331_v54 = vshrl.u32 %v330_v51, 7  ;;  %v269_v57 = vld [vmem:[%s968_s6] sm:$0xff] }
  0x2f   : > { %v278_v10 = vsel %vm277_vm2, %v273_v6, 0.0  ;;  %v279_v11 = vsel %vm277_vm2, %v274_v7, 0.0  ;;  %v281_v12 = vsel %vm277_vm2, %v275_v8, 0.0  ;;  %v272_v39 = vld [vmem:[%s968_s6 + $0x18] sm:$0xff]  ;;  %v354_v40 = vld [vmem:[#allocation3] sm:$0xff] }
  0x30   : > { %v280_v13 = vadd.f32 %v279_v11, %v278_v10  ;;  %v283_v14 = vsel %vm277_vm2, %v276_v9, 0.0  ;;  %558 = vmatpush.xpose.msk.msra.mxu1 %vm277_vm2, %v272_v39 }
  0x32   : > { %v282_v15 = vadd.f32 %v281_v12, %v280_v13 }
  0x34   : > { %v284_v16 = vadd.f32 %v283_v14, %v282_v15  ;;  %559 = vmatpush.xpose.msk.msra.mxu1 %vm277_vm2, %v271_v53 }
  0x36   : > { %v285_v17 = vrot.slane %v284_v16, 4 }
  0x38   : > { %v286_v18 = vadd.f32 %v285_v17, %v284_v16  ;;  %560 = vmatpush.xpose.msk.msra.mxu1 %vm277_vm2, %v270_v55 }
  0x3a   : > { %v287_v19 = vrot.slane %v286_v18, 2 }
  0x3c   : > { %v288_v20 = vadd.f32 %v287_v19, %v286_v18  ;;  %561 = vmatpush.xpose.msk.msra.mxu1 %vm277_vm2, %v269_v57 }
  0x3e   : > { %v289_v21 = vrot.slane %v288_v20, 1 }
  0x40   : > { %v290_v22 = vadd.f32 %v289_v21, %v288_v20 }
  0x42   : > { %v291_v23 = vmax.f32 %v290_v22, 1e-24 }
  0x44   : > { %656 = vrsqrt.f32 %v291_v23  ;;  %vm298_vm3 = vweird.f32 %v291_v23 }
  0x4a   : > { %v657_v24 = vpop.eup %656 }
  0x4b   : > { %v293_v25 = vmul.f32 %v657_v24, %v291_v23  ;;  %vm299_vm4 = vweird.f32 %v657_v24 }
  0x4c   : > { %vm300_vm5 = vmor %vm298_vm3, %vm299_vm4 }
  0x4d   : > { %v294_v26 = vmul.f32 %v657_v24, %v293_v25 }
  0x4f   : > { %v295_v27 = vmul.f32 0.5, %v294_v26 }
  0x51   : > { %v296_v28 = vsub.f32 1.5, %v295_v27 }
  0x53   : > { %v297_v29 = vmul.f32 %v657_v24, %v296_v28 }
  0x55   : > { %v301_v30 = vsel %vm300_vm5, %v657_v24, %v297_v29 }
  0x56   : > { %v305_v31 = vmul.f32 %v301_v30, %v268_v5  ;;  %v304_v32 = vmul.f32 %v301_v30, %v267_v4  ;;  %v303_v33 = vmul.f32 %v301_v30, %v266_v3  ;;  %v302_v34 = vmul.f32 %v301_v30, %v265_v2  ;;  %v356_v4 = vld [vmem:[#allocation2] sm:$0xff] }
  0x58   : > { %322 = vmatpush.msra.mxu0 %v305_v31 }
  0x5a   : > { %323 = vmatpush.msra.mxu0 %v304_v32 }
  0x5c   : > { %324 = vmatpush.msra.mxu0 %v303_v33 }
  0x5e   : > { %325 = vmatpush.msra.mxu0 %v302_v34 }
  0x5f   : > { %557 = vmatmul.msk.f32.vlgmr.msra.gmra.mxu0 %vm306_vm6, %v974_v35 }
  0xdc   : > { %v327_v36 = vpop.f32.mrf.mxu0 }
  0xdd   : > { %v332_v37 = vsel %vm277_vm2, %v327_v36, -inf }
  0xde   : > { %352 = vmax.xlane.f32.xlu0 %v332_v37  ;;  %v333_v46 = vrot.slane %v332_v37, 4 }
  0xe0   : > { %v334_v47 = vmax.f32 %v332_v37, %v333_v46 }
  0xe2   : > { %v335_v48 = vrot.slane %v334_v47, 2 }
  0xe4   : > { %v336_v49 = vmax.f32 %v334_v47, %v335_v48 }
  0xe6   : > { %v337_v50 = vrot.slane %v336_v49, 1 }
  0xe8   : > { %v338_v52 = vmax.f32 %v336_v49, %v337_v50 }
  0xea   : > { %vm339_vm8 = vcmp.eq.f32.partialorder %v327_v36, %v338_v52 }
  0xeb   : > { %v340_v56 = vsel %vm339_vm8, %v331_v54, 8 }
  0xec   : > { %v341_v58 = vsel %vm277_vm2, %v340_v56, 2147483647 }
  0xed   : > { %v342_v59 = vrot.slane %v341_v58, 4 }
  0xef   : > { %vm343_vm9 = vcmp.lt.s32.totalorder %v341_v58, %v342_v59 }
  0xf0   : > { %v344_v60 = vsel %vm343_vm9, %v341_v58, %v342_v59 }
  0xf1   : > { %v345_v61 = vrot.slane %v344_v60, 2 }
  0xf3   : > { %vm346_vm10 = vcmp.lt.s32.totalorder %v344_v60, %v345_v61 }
  0xf4   : > { %v347_v62 = vsel %vm346_vm10, %v344_v60, %v345_v61 }
  0xf5   : > { %v348_v1 = vrot.slane %v347_v62, 1 }
  0xf7   : > { %vm349_vm11 = vcmp.lt.s32.totalorder %v347_v62, %v348_v1 }
  0xf8   : > { %v350_v3 = vsel %vm349_vm11, %v347_v62, %v348_v1 }
  0xf9   : > { %vm351_vm12 = vcmp.eq.s32.totalorder %v331_v54, %v350_v3 }
 0x151   : > { %v353_v41 = vpop.xlane.xlu0 %352 }
 0x152   : > { %v355_v42 = vmax.f32 %v354_v40, %v353_v41 }
 0x154   : > { %v357_v43 = vsub.f32 %v354_v40, %v355_v42  ;;  %368 = vst.msk [vmem:[#allocation3] sm:$0xff] %vm367_vm7, %v355_v42  ;;  %371 = vperm.xlu0 %654, %v355_v42  }
 0x156   : > { %v358_v44 = vmul.f32 1.442695, %v357_v43 }
 0x158   : > { %658 = vpow2.f32 %v358_v44 }
 0x15e   : > { %v659_v45 = vpop.eup %658 }
 0x15f   : > { %362 = vperm.xlu1 %655, %v659_v45  }
 0x1c6   : > { %v372_v63 = vpop.permute.xlu0 %371 }
 0x1c7   : > { %v374_v0 = vsub.f32 %v327_v36, %v372_v63 }
 0x1c9   : > { %v375_v2 = vmul.f32 1.442695, %v374_v0 }
 0x1cb   : > { %660 = vpow2.f32 %v375_v2 }
 0x1d1   : > { %v661_v5 = vpop.eup %660  ;;  %v363_v6 = vpop.permute.xlu1 %362 }
 0x1d2   : > { %v365_v7 = vmul.f32 %v363_v6, %v356_v4  ;;  %v377_v8 = vsel %vm351_vm12, %v661_v5, 0.0 }
 0x1d3   : > { %562 = vmatmul.msk.f32.vlgmr.msra.gmra.mxu1 %vm277_vm2, %v377_v8 }
 0x1d4   : > { %366 = vst.msk [vmem:[#allocation2] sm:$0xff] %vm306_vm6, %v365_v7 }
 0x1db   : > { %v378_v9 = vld [vmem:[#allocation2] sm:$0xff] }
 0x24f   : > { %417 = sbr.rel (!%p255_p2) target bundleno = 747 (0x2eb), region = 52 }
 0x250   : > { %v411_v10 = vpop.f32.mrf.mxu1 }
 0x251   : > { %v414_v11 = vadd.f32 %v411_v10, %v378_v9 }
 0x253   : > { %415 = vst.msk [vmem:[#allocation2] sm:$0xff] %vm306_vm6, %v414_v11 }
 0x25a   : > { %v418_v12 = vld [vmem:[#allocation2] sm:$0xff] }
 0x25b   : > { %v419_v13 = vadd.f32 %v418_v12, %v974_v35 }
 0x25d   : > { %v420_v14 = vmul.f32 %v419_v13, %v419_v13 }
 0x25f   : > { %v421_v15 = vsel %vm306_vm6, %v420_v14, 0.0 }
 0x260   : > { %422 = vadd.xlane.f32.xlu0 %v421_v15 }
 0x2d3   : > { %v423_v16 = vpop.xlane.xlu0 %422 }
 0x2d4   : > { %v424_v17 = vmax.f32 %v423_v16, 1e-24 }
 0x2d6   : > { %662 = vrsqrt.f32 %v424_v17  ;;  %vm431_vm14 = vweird.f32 %v424_v17 }
 0x2dc   : > { %v663_v18 = vpop.eup %662 }
 0x2dd   : > { %v426_v19 = vmul.f32 %v663_v18, %v424_v17  ;;  %vm432_vm13 = vweird.f32 %v663_v18 }
 0x2de   : > { %vm433_vm15 = vmor %vm431_vm14, %vm432_vm13 }
 0x2df   : > { %v427_v20 = vmul.f32 %v663_v18, %v426_v19 }
 0x2e1   : > { %v428_v21 = vmul.f32 0.5, %v427_v20 }
 0x2e3   : > { %v429_v22 = vsub.f32 1.5, %v428_v21 }
 0x2e5   : > { %v430_v23 = vmul.f32 %v663_v18, %v429_v22 }
 0x2e7   : > { %v434_v24 = vsel %vm433_vm15, %v663_v18, %v430_v23 }
 0x2e8   : > { %v435_v25 = vmul.f32 %v434_v24, %v419_v13 }
 0x2ea   : > { %436 = vst.msk [vmem:[#allocation10] sm:$0xff] %vm306_vm6, %v435_v25 }
 0x2eb PF: > { %p597_p3 = scmp.eq.s32.totalorder %s936_s20, 1  ;;  %s445_s8 = sshll.u32 %s1021_s3, 4  ;;  %s446_s8 = int_to_ptr.hbm [resolvable:$true] %s445_s8 }
 0x2ec   : > { %s848_s9 = smov [#allocation10]  }
 0x2ed   : > { %s443_s19 = sshll.u32 %s848_s9, 4  ;;  %s444_s19 = int_to_ptr.vmem [resolvable:$true] %s443_s19 }
 0x2ee   : > { %580 = dma.vmem_to_hbm [thread:$0]  (%p597_p3), %s444_s19, 128, %s446_s8, [#allocation6]  }
 0x2ef   : > { %815 = dma.done.wait (%p597_p3), [#allocation6], 128  }
 0x2f0   : > { %817 = vsyncadd (%p597_p3), [#allocation6], 4294967168 }
 0x2f1 PF: > { %s18_s17 = sadd.s32 1, %s840_s17   ;;  %s1025_s12 = smov %s824_s13 }
 0x2f2   : > { %p15_p4 = scmp.ge.s32.totalorder %s18_s17, 4   ;;  %s1026_s13 = smov %s828_s14 }
 0x2f3   : > { %s1027_s14 = smov %s917_s25  ;;  %s1028_s15 = smov %s836_s16 }
 0x2f4   : > { %s1029_s16 = smov %s1031_s18  ;;  %17 = sbr.rel (!%p15_p4) target bundleno = 6 (0x6), region = 93 }
 0x2f9   :  { %459 = vsyncpa [#allocation5], 1 }
 0x2fa   :  { %461 = vsyncpa [#allocation5 + $0x1], 1 }
 0x2fb   :  { %462 = vsyncpa [#allocation8], 1 }
 0x2fc   :  { %464 = vsyncpa [#allocation8 + $0x1], 1 }
 0x2fd   :  { %465 = vsyncpa [#allocation6], 1 }
 0x2fe   :  { %467 = vsyncpa [#allocation6 + $0x1], 1 }

</bundles_post_ra>
